<compile_context>
chip_gen: v7x
topology: tpu7x:2x2x1
jax: 0.10.0
libtpu: 0.0.40
codegen_flags: <defaults>
</compile_context>

<pallas_src>
import functools
import math

import jax
import jax.numpy as jnp
from jax.experimental import pallas as pl
from jax.experimental.pallas import tpu as pltpu


# ---------------------------------------------------------------------------
# Kernel
# ---------------------------------------------------------------------------
def _noisy_linear_kernel(x_ref, eps_in_ref, wmu_ref, wsig_ref, bias_ref, o_ref):
    # x_ref:      (tb, in_f)   f32 activation tile
    # eps_in_ref: (1, in_f)    f32 input-side factorized noise (resident)
    # wmu_ref:    (in_f, tn)   bf16 weight_mu^T tile (out axis lane-dense)
    # wsig_ref:   (in_f, tn)   bf16 weight_sigma^T tile
    # bias_ref:   (2, tn)      f32 rows = [bias_mu + bias_sigma*eps_out ; eps_out]
    # o_ref:      (tb, tn)     f32 output tile
    x = x_ref[...]
    # x*eps_in is recomputed per out tile: it is cheap VPU work fully hidden
    # under the dominant weight-tile DMAs, so no cross-tile staging is done.
    x_noisy = x * eps_in_ref[...]

    w_dtype = wmu_ref.dtype                     # bf16 (or f32 if caller opts out)
    y_mu = jnp.dot(x.astype(w_dtype), wmu_ref[...],
                   preferred_element_type=jnp.float32)
    y_sig = jnp.dot(x_noisy.astype(w_dtype), wsig_ref[...],
                    preferred_element_type=jnp.float32)

    b_eff = bias_ref[0:1, :]
    eps_out = bias_ref[1:2, :]
    o_ref[...] = (y_mu + y_sig * eps_out + b_eff).astype(o_ref.dtype)


# ---------------------------------------------------------------------------
# Chip-aware tiling helpers
# ---------------------------------------------------------------------------
def _round_up(n, m):
    return ((n + m - 1) // m) * m


def _vmem_capacity_bytes():
    try:
        cap = int(pltpu.get_tpu_info().vmem_capacity_bytes)
        if cap > 0:
            return cap
    except Exception:
        pass
    return 64 << 20  # conservative default: v7x per-TensorCore VMEM


def _pick_batch_tile(batch, max_tb=512):
    if batch <= max_tb:
        return batch                      # single resident x block
    for tb in range(max_tb, 7, -8):       # largest multiple-of-8 divisor <= max_tb
        if batch % tb == 0:
            return tb
    # TODO(synk): pad the batch axis (and slice afterwards) for very large batches
    # with no multiple-of-8 divisor <= max_tb; for now fall back to one big block.
    return batch


def _pick_out_tile(out_p, footprint, budget):
    cands = [t for t in range(min(out_p, 1024), 0, -128) if out_p % t == 0]
    # Prefer >=2 steps along the parallel out axis so v7x's two TensorCores
    # both get work; within that, biggest tile that fits the VMEM budget.
    for t in cands:
        if out_p // t >= 2 and footprint(t) <= budget:
            return t
    for t in cands:
        if footprint(t) <= budget:
            return t
    # TODO(synk): if even tn=128 exceeds the VMEM budget (huge in_features), add an
    # innermost "arbitrary" K grid axis with an f32 VMEM accumulator and
    # pl.when(k==0)/pl.when(k==last) init/finalize instead of shrinking further.
    return cands[-1]


# ---------------------------------------------------------------------------
# pallas_call builder (cached per shape/dtype/config)
# ---------------------------------------------------------------------------
@functools.lru_cache(maxsize=None)
def _build_noisy_linear(batch, in_f, out_p, out_f, x_dtype_name, w_dtype_name,
                        use_buffered):
    x_dtype = jnp.dtype(x_dtype_name)
    w_dtype = jnp.dtype(w_dtype_name)

    cap = _vmem_capacity_bytes()          # 64 MiB/TC on v7x, 128 MiB on v5e/v6e
    budget = int(cap * 0.70)

    tb = _pick_batch_tile(batch)
    n_b = batch // tb if batch % tb == 0 else 1
    if batch % tb != 0:
        tb, n_b = batch, 1

    def footprint(tn):
        w = 2 * 2 * in_f * tn * w_dtype.itemsize       # 2 weight streams, 2 buffers
        xb = (1 if n_b == 1 else 2) * tb * in_f * x_dtype.itemsize
        o = 2 * tb * tn * x_dtype.itemsize
        misc = 2 * 2 * tn * 4 + 2 * in_f * 4           # bias + eps_in
        return w + xb + o + misc

    tn = _pick_out_tile(out_p, footprint, budget)
    n_j = out_p // tn

    vmem_limit = int(min(max(footprint(tn) + (4 << 20), 32 << 20), cap * 0.9))

    resident = dict(pipeline_mode=pl.Buffered(1)) if use_buffered else {}
    x_resident = resident if n_b == 1 else {}          # x varies only with b

    in_specs = [
        pl.BlockSpec((tb, in_f), lambda j, b: (b, 0), **x_resident),  # x tile
        pl.BlockSpec((1, in_f), lambda j, b: (0, 0), **resident),     # eps_in
        pl.BlockSpec((in_f, tn), lambda j, b: (0, j)),                # Wmu^T tile
        pl.BlockSpec((in_f, tn), lambda j, b: (0, j)),                # Wsig^T tile
        pl.BlockSpec((2, tn), lambda j, b: (0, j)),                   # [b_eff; eps_out]
    ]

    call = pl.pallas_call(
        _noisy_linear_kernel,
        out_shape=jax.ShapeDtypeStruct((batch, out_p), x_dtype),
        grid_spec=pltpu.PrefetchScalarGridSpec(
            num_scalar_prefetch=0,
            # out tiles outer, batch tiles inner: weight blocks are fetched
            # exactly once per out tile; only the smaller x tiles re-stream.
            grid=(n_j, n_b),
            in_specs=in_specs,
            out_specs=pl.BlockSpec((tb, tn), lambda j, b: (b, j)),
        ),
        compiler_params=pltpu.CompilerParams(
            dimension_semantics=("parallel", "parallel"),
            vmem_limit_bytes=vmem_limit,
        ),
    )

    def fwd(x, eps_in_2d, w_mu_t, w_sig_t, bias_pack):
        out = call(x, eps_in_2d, w_mu_t, w_sig_t, bias_pack)
        return out if out_p == out_f else out[:, :out_f]

    return jax.jit(fwd)


# ---------------------------------------------------------------------------
# Public forward
# ---------------------------------------------------------------------------
_PIPELINE_BUFFERED_OK = True   # flipped off if this JAX build rejects pl.Buffered(1)


def noisy_linear(x, packed):
    """Fused NoisyLinear forward. `packed` comes from pack_noisy_linear_params."""
    global _PIPELINE_BUFFERED_OK
    w_mu_t, w_sig_t = packed["w_mu_t"], packed["w_sig_t"]
    eps_in_2d, bias_pack = packed["eps_in_2d"], packed["bias_pack"]
    out_f = int(packed["out_features"])

    batch, in_f = x.shape
    in_f_w, out_p = w_mu_t.shape
    assert in_f_w == in_f
    assert w_sig_t.shape == (in_f, out_p)
    assert eps_in_2d.shape == (1, in_f)
    assert bias_pack.shape == (2, out_p)
    assert out_p % 128 == 0 and out_f <= out_p

    key = (batch, in_f, out_p, out_f,
           jnp.dtype(x.dtype).name, jnp.dtype(w_mu_t.dtype).name)
    args = (x, eps_in_2d, w_mu_t, w_sig_t, bias_pack)

    if _PIPELINE_BUFFERED_OK:
        try:
            return _build_noisy_linear(*key, True)(*args)
        except Exception:
            _PIPELINE_BUFFERED_OK = False   # graceful fallback: default 2-deep buffers
    return _build_noisy_linear(*key, False)(*args)


# ---------------------------------------------------------------------------
# Parameter construction (reset_parameters + reset_noise, factorized noise)
# ---------------------------------------------------------------------------
def _scale_noise(key, size):
    x = jax.random.normal(key, (size,), dtype=jnp.float32)
    return jnp.sign(x) * jnp.sqrt(jnp.abs(x))


def init_noisy_linear_params(key, in_features, out_features, sigma_zero=0.5):
    """PyTorch-layout params + factorized noise (eps_in, eps_out)."""
    k_wmu, k_bmu, k_ein, k_eout = jax.random.split(key, 4)
    mu_range = 1.0 / math.sqrt(in_features)
    weight_mu = jax.random.uniform(
        k_wmu, (out_features, in_features), jnp.float32, -mu_range, mu_range)
    weight_sigma = jnp.full((out_features, in_features),
                            sigma_zero / math.sqrt(in_features), jnp.float32)
    bias_mu = jax.random.uniform(
        k_bmu, (out_features,), jnp.float32, -mu_range, mu_range)
    bias_sigma = jnp.full((out_features,),
                          sigma_zero / math.sqrt(out_features), jnp.float32)
    eps_in = _scale_noise(k_ein, in_features)    # weight_epsilon = outer(eps_out, eps_in)
    eps_out = _scale_noise(k_eout, out_features)  # bias_epsilon   = eps_out
    return dict(weight_mu=weight_mu, weight_sigma=weight_sigma,
                bias_mu=bias_mu, bias_sigma=bias_sigma,
                eps_in=eps_in, eps_out=eps_out)


def pack_noisy_linear_params(p, weight_dtype=jnp.bfloat16):
    """One-time (per reset_noise) layout/precision plumbing: transpose + bf16-cast
    the weights, pad out_features to a lane multiple, precombine the effective
    bias.  All of this is kept OUT of the hot forward path."""
    w_mu_t = jnp.asarray(p["weight_mu"], jnp.float32).T.astype(weight_dtype)
    w_sig_t = jnp.asarray(p["weight_sigma"], jnp.float32).T.astype(weight_dtype)
    eps_in_2d = jnp.asarray(p["eps_in"], jnp.float32).reshape(1, -1)
    b_eff = p["bias_mu"] + p["bias_sigma"] * p["eps_out"]
    bias_pack = jnp.stack([b_eff, p["eps_out"]], axis=0).astype(jnp.float32)

    out_f = w_mu_t.shape[1]
    out_p = _round_up(out_f, 128)
    if out_p != out_f:                     # pad ONCE here; padded bias cols stay 0
        pad = out_p - out_f
        w_mu_t = jnp.pad(w_mu_t, ((0, 0), (0, pad)))
        w_sig_t = jnp.pad(w_sig_t, ((0, 0), (0, pad)))
        bias_pack = jnp.pad(bias_pack, ((0, 0), (0, pad)))

    # TODO(synk): evaluate fp8 weight storage with per-output-channel scales on
    # v7x (sigma*eps path is noise-sensitive; needs numerical validation).
    return dict(w_mu_t=w_mu_t, w_sig_t=w_sig_t, eps_in_2d=eps_in_2d,
                bias_pack=bias_pack, out_features=out_f)


# ---------------------------------------------------------------------------
# Demo + correctness check
# ---------------------------------------------------------------------------
if __name__ == "__main__":
    key = jax.random.PRNGKey(0)
    configs = [
        (8, 32, 64),       # non-lane-aligned out_features (pack-time padding path)
        (8, 128, 128),     # single out tile
        (16, 128, 384),    # multiple out tiles (>=2 parallel grid steps)
        (1024, 128, 256),  # exercises the inner batch-tiling grid axis
    ]

    for (batch, in_features, out_features) in configs:
        key, k_x, k_p = jax.random.split(key, 3)
        x = jax.random.normal(k_x, (batch, in_features), dtype=jnp.float32)
        params = init_noisy_linear_params(k_p, in_features, out_features)
        packed = pack_noisy_linear_params(params)

        out = jax.block_until_ready(noisy_linear(x, packed))
        assert out.shape == (batch, out_features)
        assert out.dtype == x.dtype

        hi = jax.lax.Precision.HIGHEST
        b_eff = params["bias_mu"] + params["bias_sigma"] * params["eps_out"]

        # (a) Tight check against the kernel's mathematical spec at bf16
        #     weight/activation storage (exact products, f32 accumulation).
        wmu_q = packed["w_mu_t"][:, :out_features].astype(jnp.float32)
        wsig_q = packed["w_sig_t"][:, :out_features].astype(jnp.float32)
        x_q = x.astype(jnp.bfloat16).astype(jnp.float32)
        xn_q = (x * params["eps_in"][None, :]).astype(jnp.bfloat16).astype(jnp.float32)
        ref_q = (jnp.dot(x_q, wmu_q, precision=hi)
                 + jnp.dot(xn_q, wsig_q, precision=hi) * params["eps_out"][None, :]
                 + b_eff[None, :])
        assert jnp.allclose(out, ref_q, atol=2e-4, rtol=2e-4), (
            f"kernel vs quantized reference mismatch at "
            f"{(batch, in_features, out_features)}: "
            f"max abs err {jnp.max(jnp.abs(out - ref_q))}")

        # (b) Sanity check against the exact PyTorch f32 semantics (bounds the
        #     bf16 weight-storage quantization error).
        weight_epsilon = jnp.outer(params["eps_out"], params["eps_in"])
        w_eff = params["weight_mu"] + params["weight_sigma"] * weight_epsilon
        ref_f32 = jnp.dot(x, w_eff.T, precision=hi) + b_eff
        assert jnp.allclose(out, ref_f32, atol=1e-1, rtol=5e-2), (
            f"kernel vs f32 reference mismatch at "
            f"{(batch, in_features, out_features)}: "
            f"max abs err {jnp.max(jnp.abs(out - ref_f32))}")

    print("KERNEL_OK")
</pallas_src>

<mosaic_0001>
module attributes {stable_mosaic.version = 11 : i64} {
  func.func @_noisy_linear_kernel(%arg0: i32, %arg1: i32, %arg2: memref<8x32xf32, #tpu.memory_space<vmem>>, %arg3: memref<1x32xf32, #tpu.memory_space<vmem>>, %arg4: memref<32x128xbf16, #tpu.memory_space<vmem>>, %arg5: memref<32x128xbf16, #tpu.memory_space<vmem>>, %arg6: memref<2x128xf32, #tpu.memory_space<vmem>>, %arg7: memref<8x128xf32, #tpu.memory_space<vmem>>) attributes {dimension_semantics = [#tpu.dimension_semantics<parallel>, #tpu.dimension_semantics<parallel>], iteration_bounds = array<i64: 1, 1>, scalar_prefetch = 0 : i64, scratch_operands = 0 : i64, tpu.core_type = #tpu.core_type<tc>, window_params = [{pipeline_mode = #tpu.pipeline_mode<synchronous>, transform_indices = @transform_0, window_bounds = array<i64: 8, 32>}, {pipeline_mode = #tpu.pipeline_mode<synchronous>, transform_indices = @transform_1, window_bounds = array<i64: 1, 32>}, {transform_indices = @transform_2, window_bounds = array<i64: 32, 128>}, {transform_indices = @transform_3, window_bounds = array<i64: 32, 128>}, {transform_indices = @transform_4, window_bounds = array<i64: 2, 128>}, {transform_indices = @transform_5, window_bounds = array<i64: 8, 128>}]} {
    %c0 = arith.constant 0 : index
    %c0_0 = arith.constant 0 : index
    %0 = vector.load %arg2[%c0, %c0_0] : memref<8x32xf32, #tpu.memory_space<vmem>>, vector<8x32xf32>
    %c0_1 = arith.constant 0 : index
    %c0_2 = arith.constant 0 : index
    %1 = vector.load %arg3[%c0_1, %c0_2] : memref<1x32xf32, #tpu.memory_space<vmem>>, vector<1x32xf32>
    %2 = vector.broadcast %1 : vector<1x32xf32> to vector<8x32xf32>
    %3 = arith.mulf %0, %2 : vector<8x32xf32>
    %4 = arith.truncf %0 : vector<8x32xf32> to vector<8x32xbf16>
    %c0_3 = arith.constant 0 : index
    %c0_4 = arith.constant 0 : index
    %5 = vector.load %arg4[%c0_3, %c0_4] : memref<32x128xbf16, #tpu.memory_space<vmem>>, vector<32x128xbf16>
    %cst = arith.constant dense<0.000000e+00> : vector<8x128xf32>
    %6 = tpu.matmul %4, %5, %cst {dimension_numbers = #tpu.dot_dimension_numbers<[1], [0], [0], [1], [0, 0, 1, 1], [], []>} : vector<8x32xbf16>, vector<32x128xbf16>, vector<8x128xf32> -> vector<8x128xf32>
    %7 = arith.truncf %3 : vector<8x32xf32> to vector<8x32xbf16>
    %c0_5 = arith.constant 0 : index
    %c0_6 = arith.constant 0 : index
    %8 = vector.load %arg5[%c0_5, %c0_6] : memref<32x128xbf16, #tpu.memory_space<vmem>>, vector<32x128xbf16>
    %cst_7 = arith.constant dense<0.000000e+00> : vector<8x128xf32>
    %9 = tpu.matmul %7, %8, %cst_7 {dimension_numbers = #tpu.dot_dimension_numbers<[1], [0], [0], [1], [0, 0, 1, 1], [], []>} : vector<8x32xbf16>, vector<32x128xbf16>, vector<8x128xf32> -> vector<8x128xf32>
    %c0_8 = arith.constant 0 : index
    %c0_9 = arith.constant 0 : index
    %10 = vector.load %arg6[%c0_8, %c0_9] : memref<2x128xf32, #tpu.memory_space<vmem>>, vector<1x128xf32>
    %c1 = arith.constant 1 : index
    %c0_10 = arith.constant 0 : index
    %11 = vector.load %arg6[%c1, %c0_10] : memref<2x128xf32, #tpu.memory_space<vmem>>, vector<1x128xf32>
    %12 = vector.broadcast %11 : vector<1x128xf32> to vector<8x128xf32>
    %13 = arith.mulf %9, %12 : vector<8x128xf32>
    %14 = arith.addf %6, %13 : vector<8x128xf32>
    %15 = vector.broadcast %10 : vector<1x128xf32> to vector<8x128xf32>
    %16 = arith.addf %14, %15 : vector<8x128xf32>
    %c0_11 = arith.constant 0 : index
    %c0_12 = arith.constant 0 : index
    %17 = vector.load %arg7[%c0_11, %c0_12] : memref<8x128xf32, #tpu.memory_space<vmem>>, vector<8x128xf32>
    tpu.vector_store %arg7[%c0_11, %c0_12], %16 {strides = array<i32>} : memref<8x128xf32, #tpu.memory_space<vmem>>, vector<8x128xf32>,
    return
  }
  func.func @transform_0(%arg0: i32, %arg1: i32) -> (i32, i32) {
    %c0_i32 = arith.constant 0 : i32
    %c0_i32_0 = arith.constant 0 : i32
    return %arg1, %c0_i32 : i32, i32
  }
  func.func @transform_1(%arg0: i32, %arg1: i32) -> (i32, i32) {
    %c0_i32 = arith.constant 0 : i32
    %c0_i32_0 = arith.constant 0 : i32
    %c0_i32_1 = arith.constant 0 : i32
    return %c0_i32, %c0_i32_0 : i32, i32
  }
  func.func @transform_2(%arg0: i32, %arg1: i32) -> (i32, i32) {
    %c0_i32 = arith.constant 0 : i32
    %c0_i32_0 = arith.constant 0 : i32
    return %c0_i32, %arg0 : i32, i32
  }
  func.func @transform_3(%arg0: i32, %arg1: i32) -> (i32, i32) {
    %c0_i32 = arith.constant 0 : i32
    %c0_i32_0 = arith.constant 0 : i32
    return %c0_i32, %arg0 : i32, i32
  }
  func.func @transform_4(%arg0: i32, %arg1: i32) -> (i32, i32) {
    %c0_i32 = arith.constant 0 : i32
    %c0_i32_0 = arith.constant 0 : i32
    return %c0_i32, %arg0 : i32, i32
  }
  func.func @transform_5(%arg0: i32, %arg1: i32) -> (i32, i32) {
    %c0_i32 = arith.constant 0 : i32
    return %arg1, %arg0 : i32, i32
  }
}

module attributes {stable_mosaic.version = 11 : i64} {
  func.func @_noisy_linear_kernel(%arg0: i32, %arg1: i32, %arg2: memref<8x32xf32, #tpu.memory_space<vmem>>, %arg3: memref<1x32xf32, #tpu.memory_space<vmem>>, %arg4: memref<32x128xbf16, #tpu.memory_space<vmem>>, %arg5: memref<32x128xbf16, #tpu.memory_space<vmem>>, %arg6: memref<2x128xf32, #tpu.memory_space<vmem>>, %arg7: memref<8x128xf32, #tpu.memory_space<vmem>>) attributes {dimension_semantics = [#tpu.dimension_semantics<parallel>, #tpu.dimension_semantics<parallel>], iteration_bounds = array<i64: 1, 1>, scalar_prefetch = 0 : i64, scratch_operands = 0 : i64, tpu.core_type = #tpu.core_type<tc>, window_params = [{transform_indices = @transform_0, window_bounds = array<i64: 8, 32>}, {pipeline_mode = #tpu.pipeline_mode<synchronous>, transform_indices = @transform_1, window_bounds = array<i64: 1, 32>}, {transform_indices = @transform_2, window_bounds = array<i64: 32, 128>}, {transform_indices = @transform_3, window_bounds = array<i64: 32, 128>}, {transform_indices = @transform_4, window_bounds = array<i64: 2, 128>}, {transform_indices = @transform_5, window_bounds = array<i64: 8, 128>}]} {
    %c0 = arith.constant 0 : index
    %c0_0 = arith.constant 0 : index
    %0 = vector.load %arg2[%c0, %c0_0] : memref<8x32xf32, #tpu.memory_space<vmem>>, vector<8x32xf32>
    %c0_1 = arith.constant 0 : index
    %c0_2 = arith.constant 0 : index
    %1 = vector.load %arg3[%c0_1, %c0_2] : memref<1x32xf32, #tpu.memory_space<vmem>>, vector<1x32xf32>
    %2 = vector.broadcast %1 : vector<1x32xf32> to vector<8x32xf32>
    %3 = arith.mulf %0, %2 : vector<8x32xf32>
    %4 = arith.truncf %0 : vector<8x32xf32> to vector<8x32xbf16>
    %c0_3 = arith.constant 0 : index
    %c0_4 = arith.constant 0 : index
    %5 = vector.load %arg4[%c0_3, %c0_4] : memref<32x128xbf16, #tpu.memory_space<vmem>>, vector<32x128xbf16>
    %cst = arith.constant dense<0.000000e+00> : vector<8x128xf32>
    %6 = tpu.matmul %4, %5, %cst {dimension_numbers = #tpu.dot_dimension_numbers<[1], [0], [0], [1], [0, 0, 1, 1], [], []>} : vector<8x32xbf16>, vector<32x128xbf16>, vector<8x128xf32> -> vector<8x128xf32>
    %7 = arith.truncf %3 : vector<8x32xf32> to vector<8x32xbf16>
    %c0_5 = arith.constant 0 : index
    %c0_6 = arith.constant 0 : index
    %8 = vector.load %arg5[%c0_5, %c0_6] : memref<32x128xbf16, #tpu.memory_space<vmem>>, vector<32x128xbf16>
    %cst_7 = arith.constant dense<0.000000e+00> : vector<8x128xf32>
    %9 = tpu.matmul %7, %8, %cst_7 {dimension_numbers = #tpu.dot_dimension_numbers<[1], [0], [0], [1], [0, 0, 1, 1], [], []>} : vector<8x32xbf16>, vector<32x128xbf16>, vector<8x128xf32> -> vector<8x128xf32>
    %c0_8 = arith.constant 0 : index
    %c0_9 = arith.constant 0 : index
    %10 = vector.load %arg6[%c0_8, %c0_9] : memref<2x128xf32, #tpu.memory_space<vmem>>, vector<1x128xf32>
    %c1 = arith.constant 1 : index
    %c0_10 = arith.constant 0 : index
    %11 = vector.load %arg6[%c1, %c0_10] : memref<2x128xf32, #tpu.memory_space<vmem>>, vector<1x128xf32>
    %12 = vector.broadcast %11 : vector<1x128xf32> to vector<8x128xf32>
    %13 = arith.mulf %9, %12 : vector<8x128xf32>
    %14 = arith.addf %6, %13 : vector<8x128xf32>
    %15 = vector.broadcast %10 : vector<1x128xf32> to vector<8x128xf32>
    %16 = arith.addf %14, %15 : vector<8x128xf32>
    %c0_11 = arith.constant 0 : index
    %c0_12 = arith.constant 0 : index
    %17 = vector.load %arg7[%c0_11, %c0_12] : memref<8x128xf32, #tpu.memory_space<vmem>>, vector<8x128xf32>
    tpu.vector_store %arg7[%c0_11, %c0_12], %16 {strides = array<i32>} : memref<8x128xf32, #tpu.memory_space<vmem>>, vector<8x128xf32>,
    return
  }
  func.func @transform_0(%arg0: i32, %arg1: i32) -> (i32, i32) {
    %c0_i32 = arith.constant 0 : i32
    %c0_i32_0 = arith.constant 0 : i32
    return %arg1, %c0_i32 : i32, i32
  }
  func.func @transform_1(%arg0: i32, %arg1: i32) -> (i32, i32) {
    %c0_i32 = arith.constant 0 : i32
    %c0_i32_0 = arith.constant 0 : i32
    %c0_i32_1 = arith.constant 0 : i32
    return %c0_i32, %c0_i32_0 : i32, i32
  }
  func.func @transform_2(%arg0: i32, %arg1: i32) -> (i32, i32) {
    %c0_i32 = arith.constant 0 : i32
    %c0_i32_0 = arith.constant 0 : i32
    return %c0_i32, %arg0 : i32, i32
  }
  func.func @transform_3(%arg0: i32, %arg1: i32) -> (i32, i32) {
    %c0_i32 = arith.constant 0 : i32
    %c0_i32_0 = arith.constant 0 : i32
    return %c0_i32, %arg0 : i32, i32
  }
  func.func @transform_4(%arg0: i32, %arg1: i32) -> (i32, i32) {
    %c0_i32 = arith.constant 0 : i32
    %c0_i32_0 = arith.constant 0 : i32
    return %c0_i32, %arg0 : i32, i32
  }
  func.func @transform_5(%arg0: i32, %arg1: i32) -> (i32, i32) {
    %c0_i32 = arith.constant 0 : i32
    return %arg1, %arg0 : i32, i32
  }
}

</mosaic_0001>

<bundles_post_ra>
// kernel: fwd.1
= control target key start
LH: loop header
LB: loop body
LE: loop exit
PB: predicated region body
PF: predicated region fallthrough
CT: control target
= control target key end

     0   :  { %10 = vsyncpa [#allocation3], 0  ;;  %s458_s0 = inlined_call_operand.hbm [shape: f32[8,32], index: 0, kind: input, shape index: {}]   ;;  %s459_s1 = inlined_call_operand.vmem [shape: f32[1,32], index: 1, kind: input, shape index: {}]   ;;  %s460_s2 = inlined_call_operand.hbm [shape: bf16[32,128], index: 2, kind: input, shape index: {}]   ;;  %s461_s3 = inlined_call_operand.hbm [shape: bf16[32,128], index: 3, kind: input, shape index: {}]   ;;  %s462_s4 = inlined_call_operand.vmem [shape: f32[2,128], index: 4, kind: input, shape index: {}]   ;;  %s463_s5 = inlined_call_operand.hbm [shape: f32[8,128], index: 5, kind: output, shape index: {}]  }
   0x1   :  { %11 = vsyncpa [#allocation6], 0 }
   0x2   :  { %12 = vsyncpa [#allocation4], 0  ;;  %s357_s18 = smov [#allocation5]   ;;  %s263_s22 = scalar_lea.hbm %s460_s2, 256 }
   0x3   :  { %s30_s19 = sshll.u32 %s357_s18, 4  ;;  %p264_p0 = scmp.ne.s32.totalorder %s460_s2, %s263_s22  ;;  %s31_s19 = int_to_ptr.vmem [resolvable:$true] %s30_s19 }
   0x4   :  { %p267_p1 = scmp.lt.u32.totalorder %s263_s22, %s460_s2 }
   0x6   :  { %p269_p2 = pnand %p267_p1, %p264_p0 }
   0x8   :  { %272 = shalt.err (!%p269_p2)
}
   0x9   :  { %s273_s27 = scalar_lea.vmem %s31_s19, 256  ;;  %p278_p4 = scmp.lt.s32.totalorder %s31_s19, %s31_s19 }
   0xa   :  { %p274_p3 = scmp.ne.s32.totalorder %s31_s19, %s273_s27  ;;  %p279_p5 = scmp.lt.s32.totalorder %s273_s27, %s273_s27 }
   0xc   :  { %p280_p6 = por %p279_p5, %p278_p4 }
   0xe   :  { %p281_p7 = pnand %p280_p6, %p274_p3 }
  0x10   :  { %284 = shalt.err (!%p281_p7)
}
  0x11   :  { %s358_s28 = smov 64   ;;  %s359_s29 = smov 4  }
  0x12   :  { %36 = dma.hbm_to_vmem [thread:$0]  %s460_s2, 256, %s31_s19, [#allocation6], %s358_s28, %s358_s28, %s359_s29  }
  0x13   :  { %s360_s7 = smov [#allocation2]   ;;  %s361_s9 = smov [#allocation7]  }
  0x14   :  { %s19_s8 = sshll.u32 %s360_s7, 4  ;;  %s42_s10 = sshll.u32 %s361_s9, 4  ;;  %s20_s8 = int_to_ptr.vmem [resolvable:$true] %s19_s8  ;;  %s43_s10 = int_to_ptr.vmem [resolvable:$true] %s42_s10 }
  0x15   :  { %s285_s13 = scalar_lea.hbm %s458_s0, 128 }
  0x16   :  { %p286_p8 = scmp.ne.s32.totalorder %s458_s0, %s285_s13  ;;  %p289_p9 = scmp.lt.u32.totalorder %s285_s13, %s458_s0 }
  0x18   :  { %p291_p10 = pnand %p289_p9, %p286_p8 }
  0x1a   :  { %294 = shalt.err (!%p291_p10)
}
  0x1b   :  { %s295_s2 = scalar_lea.vmem %s20_s8, 128  ;;  %p300_p12 = scmp.lt.s32.totalorder %s20_s8, %s20_s8 }
  0x1c   :  { %p296_p11 = scmp.ne.s32.totalorder %s20_s8, %s295_s2  ;;  %p301_p13 = scmp.lt.s32.totalorder %s295_s2, %s295_s2 }
  0x1e   :  { %p302_p0 = por %p301_p13, %p300_p12 }
  0x20   :  { %p303_p1 = pnand %p302_p0, %p296_p11 }
  0x22   :  { %306 = shalt.err (!%p303_p1)
}
  0x23   :  { %22 = dma.hbm_to_vmem [thread:$0]  %s458_s0, 128, %s20_s8, [#allocation3]  }
  0x24   :  { %s307_s22 = scalar_lea.hbm %s461_s3, 256 }
  0x25   :  { %p308_p2 = scmp.ne.s32.totalorder %s461_s3, %s307_s22  ;;  %p311_p3 = scmp.lt.u32.totalorder %s307_s22, %s461_s3 }
  0x27   :  { %p313_p4 = pnand %p311_p3, %p308_p2 }
  0x29   :  { %316 = shalt.err (!%p313_p4)
}
  0x2a   :  { %s317_s27 = scalar_lea.vmem %s43_s10, 256  ;;  %p322_p6 = scmp.lt.s32.totalorder %s43_s10, %s43_s10 }
  0x2b   :  { %p318_p5 = scmp.ne.s32.totalorder %s43_s10, %s317_s27  ;;  %p323_p7 = scmp.lt.s32.totalorder %s317_s27, %s317_s27 }
  0x2d   :  { %p324_p8 = por %p323_p7, %p322_p6 }
  0x2f   :  { %p325_p9 = pnand %p324_p8, %p318_p5 }
  0x31   :  { %328 = shalt.err (!%p325_p9)
}
  0x32   :  { %48 = dma.hbm_to_vmem [thread:$0]  %s461_s3, 256, %s43_s10, [#allocation6], %s358_s28, %s358_s28, %s359_s29  }
  0x33   :  { %351 = dma.done.wait [#allocation3], 128  }
  0x34   :  { %352 = vsyncadd [#allocation3], 4294967168 }
  0x35   :  { %353 = dma.done.wait [#allocation6], 512  }
  0x36   :  { %354 = vsyncadd [#allocation6], 4294966784  ;;  %v362_v0 = vmov 0.0   ;;  %vm363_vm0 = vmmov 0   ;;  %v259_v1 = vld [vmem:[#allocation7] sm:$0xff]   ;;  %v260_v2 = vld [vmem:[#allocation5] sm:$0xff]  }
  0x37   :  { %235 = vmatprep.subr.bf16.mxu0 %v362_v0  ;;  %243 = vmatprep.subr.bf16.mxu1 %v362_v0  ;;  %v261_v3 = vld [vmem:[#allocation7 + $0x8] sm:$0xff]   ;;  %v262_v4 = vld [vmem:[#allocation5 + $0x8] sm:$0xff]   ;;  %vm92_vm1 = vcmask 261120  }
  0x38   :  { %239 = vmatprep.mubr.msk.bf16.mxu0 %vm363_vm0, %v362_v0  ;;  %247 = vmatprep.mubr.msk.bf16.mxu1 %vm363_vm0, %v362_v0  ;;  %v61_v5 = vld [vmem:[#allocation2] sm:$0xff] }
  0x39   :  { %236 = vmatpush3.bf16.msra.mxu0 %v259_v1  ;;  %244 = vmatpush3.bf16.msra.mxu1 %v260_v2  ;;  %v220_v6 = vld [vmem:[%s459_s1] ss:$0 sm:$0xff]  ;;  %v70_v8 = vpack.c.bf16 %v61_v5, %v61_v5  ;;  %v224_v10 = vld [vmem:[%s462_s4 + $0x1] ss:$0 sm:$0xff]  ;;  %s364_s1 = smov [#allocation8]  }
  0x3a   :  { %237 = vmatprep.subr.bf16.mxu0 %v362_v0  ;;  %245 = vmatprep.subr.bf16.mxu1 %v362_v0  ;;  %v69_v7 = vmul.f32 %v220_v6, %v61_v5  ;;  %v228_v15 = vld [vmem:[%s462_s4] ss:$0 sm:$0xff]  ;;  %s210_s9 = sshll.u32 %s364_s1, 4  ;;  %s211_s9 = int_to_ptr.vmem [resolvable:$true] %s210_s9 }
  0x3b   :  { %s329_s10 = scalar_lea.vmem %s211_s9, 128  ;;  %p334_p11 = scmp.lt.s32.totalorder %s211_s9, %s211_s9 }
  0x3c   :  { %v75_v9 = vpack.c.bf16 %v69_v7, %v69_v7  ;;  %p330_p10 = scmp.ne.s32.totalorder %s211_s9, %s329_s10  ;;  %p335_p12 = scmp.lt.s32.totalorder %s329_s10, %s329_s10 }
  0x3d   :  { %238 = vmatpush3.bf16.msra.mxu0 %v261_v3  ;;  %246 = vmatpush3.bf16.msra.mxu1 %v262_v4 }
  0x3e   :  { %p336_p13 = por %p335_p12, %p334_p11 }
  0x40   :  { %240 = vmatmul.mubr.msk.bf16.vlgmr.msra.gmra.mrb[0].mxu0 %vm92_vm1, %v75_v9  ;;  %248 = vmatmul.mubr.msk.bf16.vlgmr.msra.gmra.mrb[0].mxu1 %vm92_vm1, %v70_v8  ;;  %p337_p0 = pnand %p336_p13, %p330_p10 }
 0x113   :  { %v130_v11 = vpop.f32.mrb[0].mxu0  ;;  %v192_v13 = vpop.f32.mrb[0].mxu1 }
 0x114   :  { %v142_v12 = vmul.f32 %v224_v10, %v130_v11  ;;  %v241_v14 = vpop.f32.mrb[1].mxu0  ;;  %v249_v16 = vpop.f32.mrb[1].mxu1 }
 0x115   :  { %v133_v17 = vpop.f32.mrb[2].mxu0  ;;  %v195_v19 = vpop.f32.mrb[2].mxu1 }
 0x116   :  { %v193_v18 = vadd.f32 %v192_v13, %v142_v12  ;;  %v242_v20 = vpop.f32.mrb[3].mxu0  ;;  %v250_v21 = vpop.f32.mrb[3].mxu1 }
 0x118   :  { %v202_v22 = vadd.f32 %v228_v15, %v193_v18 }
 0x11a   :  { %203 = vst [vmem:[#allocation8] sm:$0xff] %v202_v22 }
 0x11b   :  { %340 = shalt.err (!%p337_p0)
}
 0x11c   :  { %s341_s12 = scalar_lea.hbm %s463_s5, 128 }
 0x11d   :  { %p342_p1 = scmp.ne.s32.totalorder %s463_s5, %s341_s12  ;;  %p345_p2 = scmp.lt.u32.totalorder %s341_s12, %s463_s5 }
 0x11f   :  { %p347_p3 = pnand %p345_p2, %p342_p1 }
 0x121   :  { %350 = shalt.err (!%p347_p3)
}
 0x122   :  { %213 = dma.vmem_to_hbm [thread:$0]  %s211_s9, 128, %s463_s5, [#allocation4]  }
 0x123   :  { %355 = dma.done.wait [#allocation4], 128  }
 0x124   :  { %356 = vsyncadd [#allocation4], 4294967168 }
 0x125   :  { %217 = vsyncpa [#allocation3], 1 }
 0x126   :  { %218 = vsyncpa [#allocation6], 1 }
 0x127   :  { %219 = vsyncpa [#allocation4], 1 }

// kernel: fwd.1
= control target key start
LH: loop header
LB: loop body
LE: loop exit
PB: predicated region body
PF: predicated region fallthrough
CT: control target
= control target key end

     0   :  { %10 = vsyncpa [#allocation3], 0  ;;  %s458_s0 = inlined_call_operand.hbm [shape: f32[8,32], index: 0, kind: input, shape index: {}]   ;;  %s459_s1 = inlined_call_operand.vmem [shape: f32[1,32], index: 1, kind: input, shape index: {}]   ;;  %s460_s2 = inlined_call_operand.hbm [shape: bf16[32,128], index: 2, kind: input, shape index: {}]   ;;  %s461_s3 = inlined_call_operand.hbm [shape: bf16[32,128], index: 3, kind: input, shape index: {}]   ;;  %s462_s4 = inlined_call_operand.vmem [shape: f32[2,128], index: 4, kind: input, shape index: {}]   ;;  %s463_s5 = inlined_call_operand.hbm [shape: f32[8,128], index: 5, kind: output, shape index: {}]  }
   0x1   :  { %11 = vsyncpa [#allocation6], 0 }
   0x2   :  { %12 = vsyncpa [#allocation4], 0  ;;  %s357_s18 = smov [#allocation5]   ;;  %s263_s22 = scalar_lea.hbm %s460_s2, 256 }
   0x3   :  { %s30_s19 = sshll.u32 %s357_s18, 4  ;;  %p264_p0 = scmp.ne.s32.totalorder %s460_s2, %s263_s22  ;;  %s31_s19 = int_to_ptr.vmem [resolvable:$true] %s30_s19 }
   0x4   :  { %p267_p1 = scmp.lt.u32.totalorder %s263_s22, %s460_s2 }
   0x6   :  { %p269_p2 = pnand %p267_p1, %p264_p0 }
   0x8   :  { %272 = shalt.err (!%p269_p2)
}
   0x9   :  { %s273_s27 = scalar_lea.vmem %s31_s19, 256  ;;  %p278_p4 = scmp.lt.s32.totalorder %s31_s19, %s31_s19 }
   0xa   :  { %p274_p3 = scmp.ne.s32.totalorder %s31_s19, %s273_s27  ;;  %p279_p5 = scmp.lt.s32.totalorder %s273_s27, %s273_s27 }
   0xc   :  { %p280_p6 = por %p279_p5, %p278_p4 }
   0xe   :  { %p281_p7 = pnand %p280_p6, %p274_p3 }
  0x10   :  { %284 = shalt.err (!%p281_p7)
}
  0x11   :  { %s358_s28 = smov 64   ;;  %s359_s29 = smov 4  }
  0x12   :  { %36 = dma.hbm_to_vmem [thread:$0]  %s460_s2, 256, %s31_s19, [#allocation6], %s358_s28, %s358_s28, %s359_s29  }
  0x13   :  { %s360_s7 = smov [#allocation2]   ;;  %s361_s9 = smov [#allocation7]  }
  0x14   :  { %s19_s8 = sshll.u32 %s360_s7, 4  ;;  %s42_s10 = sshll.u32 %s361_s9, 4  ;;  %s20_s8 = int_to_ptr.vmem [resolvable:$true] %s19_s8  ;;  %s43_s10 = int_to_ptr.vmem [resolvable:$true] %s42_s10 }
  0x15   :  { %s285_s13 = scalar_lea.hbm %s458_s0, 128 }
  0x16   :  { %p286_p8 = scmp.ne.s32.totalorder %s458_s0, %s285_s13  ;;  %p289_p9 = scmp.lt.u32.totalorder %s285_s13, %s458_s0 }
  0x18   :  { %p291_p10 = pnand %p289_p9, %p286_p8 }
  0x1a   :  { %294 = shalt.err (!%p291_p10)
}
  0x1b   :  { %s295_s2 = scalar_lea.vmem %s20_s8, 128  ;;  %p300_p12 = scmp.lt.s32.totalorder %s20_s8, %s20_s8 }
  0x1c   :  { %p296_p11 = scmp.ne.s32.totalorder %s20_s8, %s295_s2  ;;  %p301_p13 = scmp.lt.s32.totalorder %s295_s2, %s295_s2 }
  0x1e   :  { %p302_p0 = por %p301_p13, %p300_p12 }
  0x20   :  { %p303_p1 = pnand %p302_p0, %p296_p11 }
  0x22   :  { %306 = shalt.err (!%p303_p1)
}
  0x23   :  { %22 = dma.hbm_to_vmem [thread:$0]  %s458_s0, 128, %s20_s8, [#allocation3]  }
  0x24   :  { %s307_s22 = scalar_lea.hbm %s461_s3, 256 }
  0x25   :  { %p308_p2 = scmp.ne.s32.totalorder %s461_s3, %s307_s22  ;;  %p311_p3 = scmp.lt.u32.totalorder %s307_s22, %s461_s3 }
  0x27   :  { %p313_p4 = pnand %p311_p3, %p308_p2 }
  0x29   :  { %316 = shalt.err (!%p313_p4)
}
  0x2a   :  { %s317_s27 = scalar_lea.vmem %s43_s10, 256  ;;  %p322_p6 = scmp.lt.s32.totalorder %s43_s10, %s43_s10 }
  0x2b   :  { %p318_p5 = scmp.ne.s32.totalorder %s43_s10, %s317_s27  ;;  %p323_p7 = scmp.lt.s32.totalorder %s317_s27, %s317_s27 }
  0x2d   :  { %p324_p8 = por %p323_p7, %p322_p6 }
  0x2f   :  { %p325_p9 = pnand %p324_p8, %p318_p5 }
  0x31   :  { %328 = shalt.err (!%p325_p9)
}
  0x32   :  { %48 = dma.hbm_to_vmem [thread:$0]  %s461_s3, 256, %s43_s10, [#allocation6], %s358_s28, %s358_s28, %s359_s29  }
  0x33   :  { %351 = dma.done.wait [#allocation3], 128  }
  0x34   :  { %352 = vsyncadd [#allocation3], 4294967168 }
  0x35   :  { %353 = dma.done.wait [#allocation6], 512  }
  0x36   :  { %354 = vsyncadd [#allocation6], 4294966784  ;;  %v362_v0 = vmov 0.0   ;;  %vm363_vm0 = vmmov 0   ;;  %v259_v1 = vld [vmem:[#allocation7] sm:$0xff]   ;;  %v260_v2 = vld [vmem:[#allocation5] sm:$0xff]  }
  0x37   :  { %235 = vmatprep.subr.bf16.mxu0 %v362_v0  ;;  %243 = vmatprep.subr.bf16.mxu1 %v362_v0  ;;  %v261_v3 = vld [vmem:[#allocation7 + $0x8] sm:$0xff]   ;;  %v262_v4 = vld [vmem:[#allocation5 + $0x8] sm:$0xff]   ;;  %vm92_vm1 = vcmask 261120  }
  0x38   :  { %239 = vmatprep.mubr.msk.bf16.mxu0 %vm363_vm0, %v362_v0  ;;  %247 = vmatprep.mubr.msk.bf16.mxu1 %vm363_vm0, %v362_v0  ;;  %v61_v5 = vld [vmem:[#allocation2] sm:$0xff] }
  0x39   :  { %236 = vmatpush3.bf16.msra.mxu0 %v259_v1  ;;  %244 = vmatpush3.bf16.msra.mxu1 %v260_v2  ;;  %v220_v6 = vld [vmem:[%s459_s1] ss:$0 sm:$0xff]  ;;  %v70_v8 = vpack.c.bf16 %v61_v5, %v61_v5  ;;  %v224_v10 = vld [vmem:[%s462_s4 + $0x1] ss:$0 sm:$0xff]  ;;  %s364_s1 = smov [#allocation8]  }
  0x3a   :  { %237 = vmatprep.subr.bf16.mxu0 %v362_v0  ;;  %245 = vmatprep.subr.bf16.mxu1 %v362_v0  ;;  %v69_v7 = vmul.f32 %v220_v6, %v61_v5  ;;  %v228_v15 = vld [vmem:[%s462_s4] ss:$0 sm:$0xff]  ;;  %s210_s9 = sshll.u32 %s364_s1, 4  ;;  %s211_s9 = int_to_ptr.vmem [resolvable:$true] %s210_s9 }
  0x3b   :  { %s329_s10 = scalar_lea.vmem %s211_s9, 128  ;;  %p334_p11 = scmp.lt.s32.totalorder %s211_s9, %s211_s9 }
  0x3c   :  { %v75_v9 = vpack.c.bf16 %v69_v7, %v69_v7  ;;  %p330_p10 = scmp.ne.s32.totalorder %s211_s9, %s329_s10  ;;  %p335_p12 = scmp.lt.s32.totalorder %s329_s10, %s329_s10 }
  0x3d   :  { %238 = vmatpush3.bf16.msra.mxu0 %v261_v3  ;;  %246 = vmatpush3.bf16.msra.mxu1 %v262_v4 }
  0x3e   :  { %p336_p13 = por %p335_p12, %p334_p11 }
  0x40   :  { %240 = vmatmul.mubr.msk.bf16.vlgmr.msra.gmra.mrb[0].mxu0 %vm92_vm1, %v75_v9  ;;  %248 = vmatmul.mubr.msk.bf16.vlgmr.msra.gmra.mrb[0].mxu1 %vm92_vm1, %v70_v8  ;;  %p337_p0 = pnand %p336_p13, %p330_p10 }
 0x113   :  { %v130_v11 = vpop.f32.mrb[0].mxu0  ;;  %v192_v13 = vpop.f32.mrb[0].mxu1 }
 0x114   :  { %v142_v12 = vmul.f32 %v224_v10, %v130_v11  ;;  %v241_v14 = vpop.f32.mrb[1].mxu0  ;;  %v249_v16 = vpop.f32.mrb[1].mxu1 }
 0x115   :  { %v133_v17 = vpop.f32.mrb[2].mxu0  ;;  %v195_v19 = vpop.f32.mrb[2].mxu1 }
 0x116   :  { %v193_v18 = vadd.f32 %v192_v13, %v142_v12  ;;  %v242_v20 = vpop.f32.mrb[3].mxu0  ;;  %v250_v21 = vpop.f32.mrb[3].mxu1 }
 0x118   :  { %v202_v22 = vadd.f32 %v228_v15, %v193_v18 }
 0x11a   :  { %203 = vst [vmem:[#allocation8] sm:$0xff] %v202_v22 }
 0x11b   :  { %340 = shalt.err (!%p337_p0)
}
 0x11c   :  { %s341_s12 = scalar_lea.hbm %s463_s5, 128 }
 0x11d   :  { %p342_p1 = scmp.ne.s32.totalorder %s463_s5, %s341_s12  ;;  %p345_p2 = scmp.lt.u32.totalorder %s341_s12, %s463_s5 }
 0x11f   :  { %p347_p3 = pnand %p345_p2, %p342_p1 }
 0x121   :  { %350 = shalt.err (!%p347_p3)
}
 0x122   :  { %213 = dma.vmem_to_hbm [thread:$0]  %s211_s9, 128, %s463_s5, [#allocation4]  }
 0x123   :  { %355 = dma.done.wait [#allocation4], 128  }
 0x124   :  { %356 = vsyncadd [#allocation4], 4294967168 }
 0x125   :  { %217 = vsyncpa [#allocation3], 1 }
 0x126   :  { %218 = vsyncpa [#allocation6], 1 }
 0x127   :  { %219 = vsyncpa [#allocation4], 1 }

</bundles_post_ra>
